<compile_context>
chip_gen: v7x
topology: tpu7x:2x2x1
jax: 0.10.0
libtpu: 0.0.40
codegen_flags: <defaults>
</compile_context>

<pallas_src>
import jax
import jax.numpy as jnp
from jax.experimental import pallas as pl
from jax.experimental.pallas import tpu as pltpu


def _attention_mask_kernel(x_ref, o_ref):
    # x_ref block shape: (tile_rows, H*W) -- each row is one (n, c) plane.
    x = x_ref[...]
    cols = x.shape[-1]
    # f32 accumulation of the per-plane spatial sum, without materializing a
    # full-tile f32 copy of x (matters for bf16/int8 inputs: halves/quarters
    # the live VMEM footprint so bigger tiles fit, especially on v7x).
    xsum = jnp.sum(x, axis=-1, dtype=jnp.float32, keepdims=True)   # (tile_rows, 1)
    inv = (cols * 0.5) / xsum                                       # exact divide, tiny vector
    o_ref[...] = (x.astype(jnp.float32) * inv).astype(o_ref.dtype)


_MAX_TILE_BYTES = 4 * 1024 * 1024   # ~86%+ of HBM roofline at this tile size
_MIN_TILE_BYTES = 1 * 1024 * 1024   # keep per-step (~0.35 us) overhead amortized


def _sublane_pack(itemsize):
    """Rows per native sublane pack: f32 -> 8, bf16 -> 16, int8/fp8 -> 32."""
    return max(8, 32 // max(1, itemsize))


def _choose_tile_rows(rows, cols, itemsize):
    """Pick a dtype-pack-aligned row tile: big (<= ~4 MiB) but with enough
    grid steps (>= 4, ideally 8) to pipeline DMAs on every generation."""
    sub = _sublane_pack(itemsize)
    row_bytes = cols * itemsize
    total_bytes = rows * row_bytes

    # Largest pack-aligned tile keeping each double-buffered buffer <= ~4 MiB.
    cap = max(sub, (_MAX_TILE_BYTES // max(1, row_bytes)) // sub * sub)
    tile = min(rows, cap)

    # Guarantee pipelining: >= 4 grid steps (2 per v7x TC), >= 8 for larger
    # arrays, but never shrink tiles below ~1 MiB.
    if total_bytes >= 4 * _MIN_TILE_BYTES:
        target_steps = 8 if total_bytes >= 8 * _MIN_TILE_BYTES else 4
        t = -(-rows // target_steps)                    # ceil(rows / target_steps)
        t = -(-t // sub) * sub                          # round up to sublane pack
        floor_rows = max(sub, (_MIN_TILE_BYTES // max(1, row_bytes)) // sub * sub)
        t = max(t, floor_rows)
        tile = min(tile, t)

    if tile >= rows:
        return rows                                     # full extent is always legal
    return max(sub, (tile // sub) * sub)                # pack-aligned partial tile


def _vmem_limit_bytes(tile_bytes):
    """Generation-aware VMEM limit (v7x has 64 MiB/TC vs 128 MiB on v5e/v6e)."""
    try:
        cap = int(pltpu.get_tpu_info().vmem_capacity_bytes)
    except Exception:
        cap = 64 * 1024 * 1024                          # conservative (v7x per-TC)
    # Double-buffered in + out tiles plus f32 broadcast temporaries/headroom.
    need = 6 * tile_bytes + (4 << 20)
    limit = min(max(need, 16 << 20), int(0.6 * cap))
    return int(max(limit, need))                        # never below what we need


def attention_mask(x):
    """Pallas TPU implementation of Attention_mask.forward (NCHW input)."""
    # TODO(synk): for tiny DeepPhys feature maps (a few KiB) a standalone
    # pallas_call is launch-bound; the real win is fusing this normalization
    # into the producing sigmoid at the call-site rather than tuning further.
    N, C, H, W = x.shape
    rows = N * C
    cols = H * W
    x2 = x.reshape(rows, cols)

    itemsize = jnp.dtype(x.dtype).itemsize
    tile_rows = _choose_tile_rows(rows, cols, itemsize)
    grid = (pl.cdiv(rows, tile_rows),)
    tile_bytes = tile_rows * cols * itemsize

    out2 = pl.pallas_call(
        _attention_mask_kernel,
        out_shape=jax.ShapeDtypeStruct((rows, cols), x.dtype),
        grid_spec=pltpu.PrefetchScalarGridSpec(
            num_scalar_prefetch=0,
            grid=grid,
            in_specs=[pl.BlockSpec((tile_rows, cols), lambda i: (i, 0))],
            out_specs=pl.BlockSpec((tile_rows, cols), lambda i: (i, 0)),
        ),
        compiler_params=pltpu.CompilerParams(
            dimension_semantics=("parallel",),
            vmem_limit_bytes=_vmem_limit_bytes(tile_bytes),
        ),
    )(x2)
    return out2.reshape(N, C, H, W)


def attention_mask_ref(x):
    """Pure-JAX reference matching the PyTorch semantics exactly."""
    xsum = jnp.sum(x, axis=2, keepdims=True)
    xsum = jnp.sum(xsum, axis=3, keepdims=True)
    return x / xsum * x.shape[2] * x.shape[3] * 0.5


if __name__ == "__main__":
    key = jax.random.PRNGKey(0)
    # Small NCHW input; positive values (as produced by the sigmoid that
    # precedes this mask in DeepPhys) keep the division well-defined.
    x = jax.random.uniform(
        key, (2, 4, 16, 16), dtype=jnp.float32, minval=0.1, maxval=1.0
    )

    out = attention_mask(x)
    out = jax.block_until_ready(out)

    ref = attention_mask_ref(x)
    assert out.shape == ref.shape
    assert jnp.allclose(out, ref, rtol=1e-5, atol=1e-5), "mismatch vs reference"

    print("KERNEL_OK")
</pallas_src>

<mosaic_0001>
module attributes {stable_mosaic.version = 11 : i64} {
  func.func @_attention_mask_kernel(%arg0: i32, %arg1: memref<8x256xf32, #tpu.memory_space<vmem>>, %arg2: memref<8x256xf32, #tpu.memory_space<vmem>>) attributes {dimension_semantics = [#tpu.dimension_semantics<parallel>], iteration_bounds = array<i64: 1>, scalar_prefetch = 0 : i64, scratch_operands = 0 : i64, tpu.core_type = #tpu.core_type<tc>, window_params = [{transform_indices = @transform_0, window_bounds = array<i64: 8, 256>}, {transform_indices = @transform_1, window_bounds = array<i64: 8, 256>}]} {
    %c0 = arith.constant 0 : index
    %c0_0 = arith.constant 0 : index
    %0 = vector.load %arg1[%c0, %c0_0] : memref<8x256xf32, #tpu.memory_space<vmem>>, vector<8x256xf32>
    %cst = arith.constant dense<0.000000e+00> : vector<8xf32>
    %1 = vector.multi_reduction <add>, %0, %cst [1] : vector<8x256xf32> to vector<8xf32>
    %2 = vector.shape_cast %1 : vector<8xf32> to vector<8x1xf32>
    %cst_1 = arith.constant 1.280000e+02 : f32
    %3 = vector.broadcast %cst_1 : f32 to vector<8x1xf32>
    %4 = arith.divf %3, %2 : vector<8x1xf32>
    %5 = vector.broadcast %4 : vector<8x1xf32> to vector<8x256xf32>
    %6 = arith.mulf %0, %5 : vector<8x256xf32>
    %c0_2 = arith.constant 0 : index
    %c0_3 = arith.constant 0 : index
    %7 = vector.load %arg2[%c0_2, %c0_3] : memref<8x256xf32, #tpu.memory_space<vmem>>, vector<8x256xf32>
    tpu.vector_store %arg2[%c0_2, %c0_3], %6 {strides = array<i32>} : memref<8x256xf32, #tpu.memory_space<vmem>>, vector<8x256xf32>,
    return
  }
  func.func @transform_0(%arg0: i32) -> (i32, i32) {
    %c0_i32 = arith.constant 0 : i32
    %c0_i32_0 = arith.constant 0 : i32
    return %arg0, %c0_i32 : i32, i32
  }
  func.func @transform_1(%arg0: i32) -> (i32, i32) {
    %c0_i32 = arith.constant 0 : i32
    %c0_i32_0 = arith.constant 0 : i32
    return %arg0, %c0_i32 : i32, i32
  }
}

</mosaic_0001>

<bundles_post_ra>
// kernel: tpu_custom_call.1
= control target key start
LH: loop header
LB: loop body
LE: loop exit
PB: predicated region body
PF: predicated region fallthrough
CT: control target
= control target key end

     0   :  { %6 = vsyncpa [#allocation3], 0  ;;  %s135_s0 = inlined_call_operand.hbm [shape: f32[8,256], index: 0, kind: input, shape index: {}]   ;;  %s136_s1 = inlined_call_operand.hbm [shape: f32[8,256], index: 1, kind: output, shape index: {}]  }
   0x1   :  { %7 = vsyncpa [#allocation4], 0  ;;  %s99_s6 = smov [#allocation2]   ;;  %s51_s10 = scalar_lea.hbm %s135_s0, 256 }
   0x2   :  { %s14_s7 = sshll.u32 %s99_s6, 4  ;;  %p52_p0 = scmp.ne.s32.totalorder %s135_s0, %s51_s10  ;;  %s15_s7 = int_to_ptr.vmem [resolvable:$true] %s14_s7 }
   0x3   :  { %p55_p1 = scmp.lt.u32.totalorder %s51_s10, %s135_s0 }
   0x5   :  { %p57_p2 = pnand %p55_p1, %p52_p0 }
   0x7   :  { %60 = shalt.err (!%p57_p2)
}
   0x8   :  { %s61_s15 = scalar_lea.vmem %s15_s7, 256  ;;  %p66_p4 = scmp.lt.s32.totalorder %s15_s7, %s15_s7 }
   0x9   :  { %p62_p3 = scmp.ne.s32.totalorder %s15_s7, %s61_s15  ;;  %p67_p5 = scmp.lt.s32.totalorder %s61_s15, %s61_s15 }
   0xb   :  { %p68_p6 = por %p67_p5, %p66_p4 }
   0xd   :  { %p69_p7 = pnand %p68_p6, %p62_p3 }
   0xf   :  { %72 = shalt.err (!%p69_p7)
}
  0x10   :  { %17 = dma.hbm_to_vmem [thread:$0]  %s135_s0, 256, %s15_s7, [#allocation3]  }
  0x11   :  { %95 = dma.done.wait [#allocation3], 256  }
  0x12   :  { %96 = vsyncadd [#allocation3], 4294967040  ;;  %v21_v0 = vld [vmem:[#allocation2] sm:$0xff]  ;;  %v22_v1 = vld [vmem:[#allocation2 + $0x8] sm:$0xff]  ;;  %s100_s18 = smov [#allocation5]  }
  0x13   :  { %v23_v2 = vadd.f32 %v22_v1, %v21_v0  ;;  %s38_s19 = sshll.u32 %s100_s18, 4  ;;  %s39_s19 = int_to_ptr.vmem [resolvable:$true] %s38_s19 }
  0x14   :  { %s73_s20 = scalar_lea.vmem %s39_s19, 256  ;;  %p78_p9 = scmp.lt.s32.totalorder %s39_s19, %s39_s19 }
  0x15   :  { %24 = vadd.xlane.f32.xlu0 %v23_v2  ;;  %p74_p8 = scmp.ne.s32.totalorder %s39_s19, %s73_s20  ;;  %p79_p10 = scmp.lt.s32.totalorder %s73_s20, %s73_s20 }
  0x17   :  { %p80_p11 = por %p79_p10, %p78_p9 }
  0x19   :  { %p81_p12 = pnand %p80_p11, %p74_p8 }
  0xa2   :  { %v25_v3 = vpop.xlane.xlu0 %24 }
  0xa3   :  { %49 = vrcp.f32 %v25_v3 }
  0xad   :  { %v50_v4 = vpop.eup %49 }
  0xae   :  { %v27_v5 = vmul.f32 128.0, %v50_v4 }
  0xb0   :  { %v28_v6 = vmul.f32 %v27_v5, %v21_v0  ;;  %v29_v7 = vmul.f32 %v27_v5, %v22_v1 }
  0xb2   :  { %30 = vst [vmem:[#allocation5] sm:$0xff] %v28_v6  ;;  %31 = vst [vmem:[#allocation5 + $0x8] sm:$0xff] %v29_v7 }
  0xb3   :  { %84 = shalt.err (!%p81_p12)
}
  0xb4   :  { %s85_s22 = scalar_lea.hbm %s136_s1, 256 }
  0xb5   :  { %p86_p13 = scmp.ne.s32.totalorder %s136_s1, %s85_s22  ;;  %p89_p0 = scmp.lt.u32.totalorder %s85_s22, %s136_s1 }
  0xb7   :  { %p91_p1 = pnand %p89_p0, %p86_p13 }
  0xb9   :  { %94 = shalt.err (!%p91_p1)
}
  0xba   :  { %41 = dma.vmem_to_hbm [thread:$0]  %s39_s19, 256, %s136_s1, [#allocation4]  }
  0xbb   :  { %97 = dma.done.wait [#allocation4], 256  }
  0xbc   :  { %98 = vsyncadd [#allocation4], 4294967040 }
  0xbd   :  { %45 = vsyncpa [#allocation3], 1 }
  0xbe   :  { %46 = vsyncpa [#allocation4], 1 }

</bundles_post_ra>
